<compile_context>
chip_gen: v7x
topology: tpu7x:2x2x1
jax: 0.10.0
libtpu: 0.0.40
codegen_flags: <defaults>
</compile_context>

<pallas_src>
import functools
import math

import jax
import jax.numpy as jnp
from jax import lax
from jax.experimental import pallas as pl
from jax.experimental.pallas import tpu as pltpu


# ----------------------------------------------------------------------------
# Pallas kernels
# ----------------------------------------------------------------------------
def _mm_single_k_kernel(a_ref, b_ref, ss_ref, o_ref, *, relu):
    """MXU matmul with the whole K dimension in one block: no VMEM accumulator RMW,
    fused BN scale/shift (+ReLU) epilogue, single bf16 store."""
    acc = jnp.dot(a_ref[...], b_ref[...], preferred_element_type=jnp.float32)
    ss = ss_ref[...]                              # (2, tn) f32: row0 = scale, row1 = shift
    y = acc * ss[0:1, :] + ss[1:2, :]
    if relu:
        y = jnp.maximum(y, 0.0)
    o_ref[...] = y.astype(o_ref.dtype)


def _mm_reduce_kernel(a_ref, b_ref, ss_ref, o_ref, acc_ref, *, relu):
    """Fallback for K too large for a single block: f32 VMEM accumulator across the
    innermost 'arbitrary' grid axis, epilogue on the last K step."""
    @pl.when(pl.program_id(2) == 0)
    def _init():
        acc_ref[...] = jnp.zeros_like(acc_ref)

    acc_ref[...] += jnp.dot(a_ref[...], b_ref[...], preferred_element_type=jnp.float32)

    @pl.when(pl.program_id(2) == pl.num_programs(2) - 1)
    def _finalize():
        ss = ss_ref[...]
        y = acc_ref[...] * ss[0:1, :] + ss[1:2, :]
        if relu:
            y = jnp.maximum(y, 0.0)
        o_ref[...] = y.astype(o_ref.dtype)


@functools.partial(jax.jit, static_argnames=("tm", "tn", "tk", "relu"))
def _mm_pallas(a_p, b_p, ss_p, *, tm, tn, tk, relu):
    m_pad, k_pad = a_p.shape
    _, n_pad = b_p.shape
    nm, nn, nk = m_pad // tm, n_pad // tn, k_pad // tk

    if nk == 1:
        # Resident-B / single-K path: B (and ss) block index is constant across the i axis,
        # so the weight matrix is DMA'd once; no scratch accumulator is allocated.
        return pl.pallas_call(
            functools.partial(_mm_single_k_kernel, relu=relu),
            out_shape=jax.ShapeDtypeStruct((m_pad, n_pad), jnp.bfloat16),
            grid_spec=pltpu.PrefetchScalarGridSpec(
                num_scalar_prefetch=0,
                grid=(nm, nn),
                in_specs=[
                    pl.BlockSpec((tm, k_pad), lambda i, j: (i, 0)),
                    pl.BlockSpec((k_pad, tn), lambda i, j: (0, j)),
                    pl.BlockSpec((2, tn), lambda i, j: (0, j)),
                ],
                out_specs=pl.BlockSpec((tm, tn), lambda i, j: (i, j)),
            ),
            compiler_params=pltpu.CompilerParams(
                dimension_semantics=("parallel", "parallel"),
                vmem_limit_bytes=32 * 1024 * 1024,   # worst-case footprint here ~11 MiB; v7x-safe
            ),
        )(a_p, b_p, ss_p)

    return pl.pallas_call(
        functools.partial(_mm_reduce_kernel, relu=relu),
        out_shape=jax.ShapeDtypeStruct((m_pad, n_pad), jnp.bfloat16),
        grid_spec=pltpu.PrefetchScalarGridSpec(
            num_scalar_prefetch=0,
            grid=(nm, nn, nk),
            in_specs=[
                pl.BlockSpec((tm, tk), lambda i, j, k: (i, k)),
                pl.BlockSpec((tk, tn), lambda i, j, k: (k, j)),
                pl.BlockSpec((2, tn), lambda i, j, k: (0, j)),
            ],
            out_specs=pl.BlockSpec((tm, tn), lambda i, j, k: (i, j)),
            scratch_shapes=[pltpu.VMEM((tm, tn), jnp.float32)],
        ),
        compiler_params=pltpu.CompilerParams(
            dimension_semantics=("parallel", "parallel", "arbitrary"),
            vmem_limit_bytes=32 * 1024 * 1024,
        ),
    )(a_p, b_p, ss_p)


def _maxpool_kernel(ee_ref, eo_ref, oe_ref, oo_ref, o_ref, *, oh, ow):
    # Inputs are the 4 stride-2 phase views of x (even/odd rows x even/odd cols).
    # Only static unit-stride slices are needed to realize the 3x3/stride-2 window max.
    ee = ee_ref[0]
    eo = eo_ref[0]
    oe = oe_ref[0]
    oo = oo_ref[0]
    m = ee[:oh, :ow]
    m = jnp.maximum(m, ee[:oh, 1:ow + 1])
    m = jnp.maximum(m, ee[1:oh + 1, :ow])
    m = jnp.maximum(m, ee[1:oh + 1, 1:ow + 1])
    m = jnp.maximum(m, eo[:oh, :ow])
    m = jnp.maximum(m, eo[1:oh + 1, :ow])
    m = jnp.maximum(m, oe[:oh, :ow])
    m = jnp.maximum(m, oe[:oh, 1:ow + 1])
    m = jnp.maximum(m, oo[:oh, :ow])
    o_ref[0] = m


@jax.jit
def _maxpool_pallas(ee, eo, oe, oo):
    n, hh, wh, c = ee.shape
    oh, ow = hh - 1, wh - 1
    return pl.pallas_call(
        functools.partial(_maxpool_kernel, oh=oh, ow=ow),
        out_shape=jax.ShapeDtypeStruct((n, oh, ow, c), ee.dtype),
        grid_spec=pltpu.PrefetchScalarGridSpec(
            num_scalar_prefetch=0,
            grid=(n,),
            in_specs=[pl.BlockSpec((1, hh, wh, c), lambda b: (b, 0, 0, 0))] * 4,
            out_specs=pl.BlockSpec((1, oh, ow, c), lambda b: (b, 0, 0, 0)),
        ),
        compiler_params=pltpu.CompilerParams(
            dimension_semantics=("arbitrary",)),
    )(ee, eo, oe, oo)


# ----------------------------------------------------------------------------
# Conv / pool wrappers (im2col + Pallas matmul)
# ----------------------------------------------------------------------------
def _round_up(x, m):
    return (x + m - 1) // m * m


def _tile(d, single_cap, multi):
    """Single block if the (128-padded) dim fits under `single_cap`; otherwise use a fixed
    `multi`-sized tile and pad the dim up to it (no degenerate small-tile fallback)."""
    d128 = _round_up(d, 128)
    if d128 <= single_cap:
        return d128, d128
    return multi, _round_up(d, multi)


def _axis_taps(k, dil, stride, size, o_size, padding):
    """Kernel-tap indices along one spatial axis that can touch real (non-pad) input.

    Dropping a tap is exact only when *every* output position samples padding there;
    the test below is conservative (never drops a live tap).  All arguments are static
    Python ints (shapes / layer hyper-parameters), so this runs at trace time."""
    alive = []
    for idx in range(k):
        lo = idx * dil
        hi = idx * dil + (o_size - 1) * stride
        if hi >= padding and lo <= padding + size - 1:
            alive.append(idx)
    if not alive:                      # degenerate all-padding conv: keep one (zero) tap
        alive = [0]
    return alive


def _im2col(x, kh, kw, stride, padding, dilation):
    """im2col with dead-tap elimination and minimal zero-padding.

    This network convolves tiny 2x2 feature maps with large dilation+padding (3x3 dil 2/4,
    7x7 dil 2 pad 6): most taps sample only zero-padding, so they are dropped from both A
    and the weight matrix, collapsing e.g. pool3_att_1's K from 25088 to 512 and avoiding
    the 9x/49x HBM blow-up a naive materialized im2col (and its padded input) would cause.
    """
    n, h, w, c = x.shape
    eff_kh = dilation * (kh - 1) + 1
    eff_kw = dilation * (kw - 1) + 1
    oh = (h + 2 * padding - eff_kh) // stride + 1
    ow = (w + 2 * padding - eff_kw) // stride + 1

    rows = _axis_taps(kh, dilation, stride, h, oh, padding)
    cols = _axis_taps(kw, dilation, stride, w, ow, padding)

    min_r, max_r = rows[0] * dilation, rows[-1] * dilation + (oh - 1) * stride
    min_c, max_c = cols[0] * dilation, cols[-1] * dilation + (ow - 1) * stride
    pb_h = max(0, padding - min_r)
    pa_h = max(0, max_r - (padding + h - 1))
    pb_w = max(0, padding - min_c)
    pa_w = max(0, max_c - (padding + w - 1))
    off_h = padding - pb_h
    off_w = padding - pb_w

    if pb_h or pa_h or pb_w or pa_w:
        xp = jnp.pad(x, ((0, 0), (pb_h, pa_h), (pb_w, pa_w), (0, 0)))
    else:
        xp = x

    taps = []
    for i in rows:
        r0 = i * dilation - off_h
        for j in cols:
            c0 = j * dilation - off_w
            taps.append(xp[:, r0:r0 + (oh - 1) * stride + 1:stride,
                              c0:c0 + (ow - 1) * stride + 1:stride, :])
    a = taps[0] if len(taps) == 1 else jnp.concatenate(taps, axis=-1)
    a = a.reshape(n * oh * ow, len(taps) * c)
    return a, (rows, cols), (n, oh, ow)


def _matmul_scale_shift(a, b, scale, shift, relu):
    m, k = a.shape
    _, n = b.shape
    # Single-K / single-N blocks (resident weights) for every layer of this network; if a
    # dimension is too big, split along M first (B stays the small, resident operand).
    tm, m_pad = _tile(m, 1024, 512)
    tk, k_pad = _tile(k, 4096, 2048)
    tn, n_pad = _tile(n, 2048, 512)

    a_p = a.astype(jnp.bfloat16)
    b_p = b.astype(jnp.bfloat16)
    if (m_pad - m) or (k_pad - k):
        a_p = jnp.pad(a_p, ((0, m_pad - m), (0, k_pad - k)))
    if (k_pad - k) or (n_pad - n):
        b_p = jnp.pad(b_p, ((0, k_pad - k), (0, n_pad - n)))
    ss = jnp.stack([jnp.pad(scale.astype(jnp.float32), (0, n_pad - n)),
                    jnp.pad(shift.astype(jnp.float32), (0, n_pad - n))], axis=0)
    out = _mm_pallas(a_p, b_p, ss, tm=tm, tn=tn, tk=tk, relu=relu)
    return out[:m, :n]


def conv2d_bn_act(x, conv, bn=None, *, stride=1, padding=0, dilation=1, relu=False):
    """Conv2d (+BatchNorm eval stats) (+ReLU) as a single fused Pallas matmul kernel."""
    w = conv["w"]                                      # [KH, KW, Cin, Cout] (HWIO), bf16
    kh, kw, cin, cout = w.shape
    a, (rows, cols), (n, oh, ow) = _im2col(x, kh, kw, stride, padding, dilation)
    if len(rows) == kh and len(cols) == kw:
        b = w.reshape(kh * kw * cin, cout)
    else:
        b = jnp.concatenate([w[i, j] for i in rows for j in cols], axis=0)
    bias = conv["b"] if conv["b"] is not None else jnp.zeros((cout,), jnp.float32)
    if bn is not None:
        # TODO(synk): BatchNorm is applied with eval-mode running statistics; training-mode
        #             batch statistics would require an extra cross-batch reduction pass.
        scale = bn["gamma"] / jnp.sqrt(bn["var"] + 1e-5)
        shift = (bias - bn["mean"]) * scale + bn["beta"]
    else:
        scale = jnp.ones((cout,), jnp.float32)
        shift = bias
    y = _matmul_scale_shift(a, b, scale, shift, relu)
    return y.reshape(n, oh, ow, cout)


def maxpool_3x3_s2(x):
    """MaxPool2d(kernel=3, stride=2) without materializing 9 window copies in HBM."""
    n, h, w, c = x.shape
    assert h % 2 == 0 and w % 2 == 0, "maxpool helper expects even spatial dims"
    ee = x[:, 0::2, 0::2, :]
    eo = x[:, 0::2, 1::2, :]
    oe = x[:, 1::2, 0::2, :]
    oo = x[:, 1::2, 1::2, :]
    return _maxpool_pallas(ee, eo, oe, oo)


# ----------------------------------------------------------------------------
# Deterministic parameter construction (mirrors the nn.Module __init__ shapes)
# ----------------------------------------------------------------------------
class ParamGen:
    def __init__(self, key):
        self.key = key

    def _next(self):
        self.key, k = jax.random.split(self.key)
        return k

    def conv(self, kh, kw, cin, cout, bias=True):
        w = jax.random.normal(self._next(), (kh, kw, cin, cout), jnp.float32)
        w = (w * (1.0 / math.sqrt(kh * kw * cin))).astype(jnp.bfloat16)
        b = (0.01 * jax.random.normal(self._next(), (cout,), jnp.float32)) if bias else None
        return {"w": w, "b": b}

    def bn(self, c):
        return {
            "gamma": 1.0 + 0.1 * jax.random.normal(self._next(), (c,), jnp.float32),
            "beta": 0.1 * jax.random.normal(self._next(), (c,), jnp.float32),
            "mean": 0.1 * jax.random.normal(self._next(), (c,), jnp.float32),
            "var": 1.0 + 0.1 * jax.random.uniform(self._next(), (c,), jnp.float32),
        }


def make_elong(pg, cin, cmed, cout, stage, stride=None):
    # _ElongShortcut: conv1 (k1 or k2) -> [BN, ReLU, 3x3 conv, BN, ReLU, 1x1 conv, BN]
    # NOTE: pad/dilation of the 3x3 conv are *static* per call site (see _elong_shortcut);
    #       they are deliberately NOT stored in the params pytree so jit keeps them concrete.
    k1 = 1 if ((stage in (2, 3) and stride is False) or stage in (4, 5)) else 2
    bias3 = stage in (2, 3)    # final 1x1 conv has bias only in stages 2/3 (per reference)
    return {
        "conv1": pg.conv(k1, k1, cin, cmed, bias=False), "bn1": pg.bn(cmed),
        "conv2": pg.conv(3, 3, cmed, cmed, bias=False), "bn2": pg.bn(cmed),
        "conv3": pg.conv(1, 1, cmed, cout, bias=bias3), "bn3": pg.bn(cout),
    }


def make_params(key):
    pg = ParamGen(key)
    inc = 64  # Encoder(inchannel=64) is hard-coded in Decoder.__init__
    enc = {
        "conv1": pg.conv(7, 7, inc, 64, bias=True), "bn1": pg.bn(64),
        "sc2a_1": {"conv": pg.conv(1, 1, inc, inc * 4, bias=False), "bn": pg.bn(inc * 4)},
        "sc2bc": make_elong(pg, inc * 4, inc, inc * 4, stage=2),
        "sc3a_1": {"conv": pg.conv(1, 1, inc * 4, inc * 8, bias=False), "bn": pg.bn(inc * 8)},
        "sc3bcd": make_elong(pg, inc * 8, inc * 2, inc * 8, stage=3),
        "sc4a_1": {"conv": pg.conv(1, 1, inc * 8, inc * 16, bias=False), "bn": pg.bn(inc * 16)},
        "sc4a_2": make_elong(pg, inc * 8, inc * 4, inc * 16, stage=4, stride=False),
        "sc4bcdef": make_elong(pg, inc * 16, inc * 4, inc * 16, stage=4),
        "sc5a_1": {"conv": pg.conv(1, 1, inc * 16, inc * 32, bias=False), "bn": pg.bn(inc * 32)},
        "sc5a_2": make_elong(pg, inc * 16, inc * 8, inc * 32, stage=5, stride=False),
        "sc5bc": make_elong(pg, inc * 32, inc * 8, inc * 32, stage=5),
    }
    # Decoder layers actually reachable from forward().  Decoder.conv1/bn1/pooling1,
    # conv4_b4/conv3_b4 and the duplicated attention5 are defined but never used.
    # TODO(synk): the reference's conv5 is Conv2d(inchannel, 1024, 1); the tensor it is applied
    #             to has 2048 channels, so 2048 is used here.
    return {
        "encode": enc,
        "conv5": pg.conv(1, 1, 2048, 1024, bias=True), "bn5": pg.bn(1024),
        "conv4_1": pg.conv(1, 1, 1024, 512, bias=True), "bn4": pg.bn(512),
        "pool3_att_1": pg.conv(7, 7, 512, 128, bias=True),
        "pool3_att_2": pg.conv(1, 1, 128, 49, bias=True), "bn3": pg.bn(49),
    }


# ----------------------------------------------------------------------------
# Module blocks / forward pass
# ----------------------------------------------------------------------------
def _basic_shortcut(x, p, stride, relu_out):
    return conv2d_bn_act(x, p["conv"], p["bn"], stride=stride, relu=relu_out)


def _elong_shortcut(x, p, pad, dil, relu_out):
    # pad/dil are static Python ints per stage (2/3 -> 1,1 ; 4 -> 2,2 ; 5 -> 4,4).
    # TODO(synk): the reference builds shortcut_4a_2 with Conv2d(dilation=None), which is
    #             invalid in PyTorch; dilation=2 (matching padding=2) is used instead.
    h = conv2d_bn_act(x, p["conv1"], p["bn1"], relu=True)
    h = conv2d_bn_act(h, p["conv2"], p["bn2"], padding=pad, dilation=dil, relu=True)
    # relu_out fuses the ReLU that the reference applies right after the dim-0 concat
    # (elementwise, so it commutes with concatenation and is idempotent on repeats).
    return conv2d_bn_act(h, p["conv3"], p["bn3"], relu=relu_out)


def encoder_forward(p, x):
    """Returns enc2, enc3 (dense, batch n0) and the DEDUP'd stage-4/5 outputs as
    (unique_groups, order): order[i] is the index of the unique group that occupies batch
    slot i of the reference's dense dim-0-concatenated tensor (each group is n0 rows)."""
    h = conv2d_bn_act(x, p["conv1"], p["bn1"], stride=2, padding=3, relu=True)
    h = maxpool_3x3_s2(h)

    # ---- stage 2 ----
    b2a = _basic_shortcut(h, p["sc2a_1"], stride=1, relu_out=True)
    # TODO(synk): shortcut_2a_2's kernel-2 conv shrinks spatial by 1, so the reference
    #             torch.cat(dim=0) with shortcut_2a_1 is shape-inconsistent; branch dropped.
    # TODO(synk): the reference applies shortcut_2bc (256-ch input) to the 64-ch stem output
    #             and cats tensors of different spatial size; here the 2bc block is chained on
    #             the previous branch and the invalid dim-0 concats are dropped.
    b2b = _elong_shortcut(b2a, p["sc2bc"], 1, 1, relu_out=True)
    enc2 = _elong_shortcut(b2b, p["sc2bc"], 1, 1, relu_out=True)

    # ---- stage 3 ----
    b3a = _basic_shortcut(enc2, p["sc3a_1"], stride=2, relu_out=False)
    # TODO(synk): shortcut_3a_2 / shortcut_3bcd kernel-2 convs make the reference dim-0
    #             concats shape-inconsistent; concats dropped, blocks chained sequentially.
    b3b = _elong_shortcut(b3a, p["sc3bcd"], 1, 1, relu_out=True)
    b3c = _elong_shortcut(b3b, p["sc3bcd"], 1, 1, relu_out=True)
    enc3 = _elong_shortcut(b3c, p["sc3bcd"], 1, 1, relu_out=True)

    # ---- stage 4 (dedup of the reference's x4b..x4e concat chain) ----
    # Unique groups are E^d(base) for base in {4a_1(enc3), 4a_2(enc3)} and depth d=0..4;
    # flat unique index = 2*depth + base (E = shortcut_4bcdef).
    a4 = _basic_shortcut(enc3, p["sc4a_1"], stride=1, relu_out=True)
    b4 = _elong_shortcut(enc3, p["sc4a_2"], 2, 2, relu_out=True)
    s4 = [jnp.concatenate([a4, b4], axis=0)]
    for _ in range(4):
        s4.append(_elong_shortcut(s4[-1], p["sc4bcdef"], 2, 2, relu_out=True))
    u4 = jnp.concatenate(s4, axis=0)                    # 10 unique groups
    o4 = [0, 1]                                         # x_branch4a = cat(4a_1, 4a_2)
    for _ in range(4):                                  # x4{b,c,d,e} = cat(E(prev), prev)
        o4 = [i + 2 for i in o4] + o4                   # E shifts depth -> +2 in flat index
    # len(o4) == 32, values in [0, 10)

    # ---- stage 5 (same dedup; bases = {5a_1, 5a_2} applied to every enc4 unique group) ----
    c5 = _basic_shortcut(u4, p["sc5a_1"], stride=1, relu_out=True)
    d5 = _elong_shortcut(u4, p["sc5a_2"], 4, 4, relu_out=True)
    t0 = jnp.concatenate([c5, d5], axis=0)              # 20 groups; idx = branch*10 + k4
    t1 = _elong_shortcut(t0, p["sc5bc"], 4, 4, relu_out=True)
    t2 = _elong_shortcut(t1, p["sc5bc"], 4, 4, relu_out=True)
    u5 = jnp.concatenate([t0, t1, t2], axis=0)          # 60 groups; idx = 20*depth + branch*10 + k4
    o5a = o4 + [i + 10 for i in o4]                     # x_branch5a = cat(5a_1, 5a_2)
    o5b = [i + 20 for i in o5a] + o5a                   # x_branch5b = cat(E(5a), 5a)
    o5 = o5b + [i + 20 for i in o5b]                    # x_branch5c = cat(5b, E(5b))
    # len(o5) == 256, values in [0, 60)

    return enc2, enc3, (u4, o4), (u5, o5)


@jax.jit
def decoder_forward(params, x_nchw):
    x = jnp.transpose(x_nchw, (0, 2, 3, 1)).astype(jnp.bfloat16)   # NCHW -> NHWC, bf16
    n0 = x.shape[0]
    enc2, enc3, (u4, o4), (u5, o5) = encoder_forward(params["encode"], x)
    del enc2  # returned by the Encoder but unused by Decoder.forward

    # TODO(synk): AttentionGlobal is not defined in the reference source; att5/att4 pass through.
    # decode_branch5 = cat(enc5, att5) -> duplicated order over the same 60 unique groups.
    od5 = o5 + o5
    v5 = conv2d_bn_act(u5, params["conv5"], params["bn5"], relu=True)       # conv5+bn5+relu

    # decode_branch4 = cat(enc4, decode_branch5); then cat(d4, att4).
    # TODO(synk): self.conv4, self.attention4 and self.conv3 are referenced in forward() but
    #             never defined in __init__; they are skipped here (the surrounding ReLUs are
    #             no-ops since both concat operands are already non-negative).
    od4 = o4 + [i + 10 for i in od5]
    od4 = od4 + od4                                                         # 1088 slots
    p4 = jnp.concatenate([u4, v5], axis=0)                                  # 70 unique groups
    w4 = conv2d_bn_act(p4, params["conv4_1"], params["bn4"], relu=True)     # conv4_1+bn4+relu

    # decode_branch3 = cat(decode_branch4, enc3)
    od3 = od4 + [70]                                                        # 1089 slots
    p3 = jnp.concatenate([w4, enc3], axis=0)                                # 71 unique groups
    y = conv2d_bn_act(p3, params["pool3_att_1"], None, padding=6, dilation=2, relu=True)
    y = conv2d_bn_act(y, params["pool3_att_2"], params["bn3"], relu=False)

    # Reconstruct the reference's dim-0-concatenated batch from the unique groups (bit-exact
    # row copies), then convert back to NCHW.
    u, oh, ow, c = y.shape
    y = y.reshape(u // n0, n0, oh, ow, c)
    idx = jnp.asarray(od3, dtype=jnp.int32)
    out = jnp.take(y, idx, axis=0).reshape(len(od3) * n0, oh, ow, c)
    # TODO(synk): the reference forward has no return statement (returns None); the final
    #             tensor is returned here (converted back to NCHW, f32) so it can be materialized.
    return jnp.transpose(out, (0, 3, 1, 2)).astype(jnp.float32)


# ----------------------------------------------------------------------------
# Main
# ----------------------------------------------------------------------------
if __name__ == "__main__":
    key = jax.random.PRNGKey(0)
    pkey, xkey, ckey = jax.random.split(key, 3)

    # --- sanity check 1: strided + dilated conv (all taps alive) vs lax.conv ---
    cx = jax.random.normal(ckey, (2, 9, 9, 32), jnp.float32).astype(jnp.bfloat16)
    cw = (jax.random.normal(jax.random.fold_in(ckey, 1), (3, 3, 32, 64), jnp.float32)
          / math.sqrt(3 * 3 * 32)).astype(jnp.bfloat16)
    got = conv2d_bn_act(cx, {"w": cw, "b": None}, None,
                        stride=2, padding=2, dilation=2).astype(jnp.float32)
    want = lax.conv_general_dilated(cx.astype(jnp.float32), cw.astype(jnp.float32),
                                    window_strides=(2, 2), padding=[(2, 2), (2, 2)],
                                    rhs_dilation=(2, 2),
                                    dimension_numbers=("NHWC", "HWIO", "NHWC"))
    rel = jnp.max(jnp.abs(got - want)) / (jnp.max(jnp.abs(want)) + 1e-6)
    assert float(rel) < 2e-2, f"conv kernel mismatch, rel err {float(rel)}"

    # --- sanity check 2: tiny input + big dilation/padding (dead-tap elimination path) ---
    dx = jax.random.normal(jax.random.fold_in(ckey, 2), (3, 2, 2, 16), jnp.float32).astype(jnp.bfloat16)
    dw = (jax.random.normal(jax.random.fold_in(ckey, 3), (3, 3, 16, 32), jnp.float32)
          / math.sqrt(3 * 3 * 16)).astype(jnp.bfloat16)
    got2 = conv2d_bn_act(dx, {"w": dw, "b": None}, None,
                         stride=1, padding=4, dilation=4).astype(jnp.float32)
    want2 = lax.conv_general_dilated(dx.astype(jnp.float32), dw.astype(jnp.float32),
                                     window_strides=(1, 1), padding=[(4, 4), (4, 4)],
                                     rhs_dilation=(4, 4),
                                     dimension_numbers=("NHWC", "HWIO", "NHWC"))
    rel2 = jnp.max(jnp.abs(got2 - want2)) / (jnp.max(jnp.abs(want2)) + 1e-6)
    assert float(rel2) < 2e-2, f"dilated conv (dead-tap) mismatch, rel err {float(rel2)}"

    # --- sanity check 3: maxpool vs lax.reduce_window ---
    px = jax.random.normal(jax.random.fold_in(ckey, 4), (2, 12, 16, 64), jnp.float32).astype(jnp.bfloat16)
    pool_got = maxpool_3x3_s2(px).astype(jnp.float32)
    pool_want = lax.reduce_window(px.astype(jnp.float32), -jnp.inf, lax.max,
                                  (1, 3, 3, 1), (1, 2, 2, 1), "VALID")
    assert float(jnp.max(jnp.abs(pool_got - pool_want))) < 1e-6, "maxpool kernel mismatch"

    params = make_params(pkey)
    # Input consistent with the module: the Decoder feeds x straight into Encoder(inchannel=64),
    # so x has 64 channels; small spatial 48x48 keeps every layer's output size valid.
    x = jax.random.normal(xkey, (1, 64, 48, 48), jnp.float32)      # NCHW, like PyTorch

    out = decoder_forward(params, x)
    out = jax.block_until_ready(out)
    assert out.shape == (1089, 49, 2, 2), out.shape
    assert bool(jnp.all(jnp.isfinite(out)))
    print("KERNEL_OK")
</pallas_src>

<mosaic_0001>
module attributes {stable_mosaic.version = 11 : i64} {
  func.func @_mm_single_k_kernel(%arg0: i32, %arg1: i32, %arg2: memref<128x384xbf16, #tpu.memory_space<vmem>>, %arg3: memref<384x128xbf16, #tpu.memory_space<vmem>>, %arg4: memref<2x128xf32, #tpu.memory_space<vmem>>, %arg5: memref<128x128xbf16, #tpu.memory_space<vmem>>) attributes {dimension_semantics = [#tpu.dimension_semantics<parallel>, #tpu.dimension_semantics<parallel>], iteration_bounds = array<i64: 1, 1>, scalar_prefetch = 0 : i64, scratch_operands = 0 : i64, tpu.core_type = #tpu.core_type<tc>, window_params = [{transform_indices = @transform_0, window_bounds = array<i64: 128, 384>}, {transform_indices = @transform_1, window_bounds = array<i64: 384, 128>}, {transform_indices = @transform_2, window_bounds = array<i64: 2, 128>}, {transform_indices = @transform_3, window_bounds = array<i64: 128, 128>}]} {
    %c0 = arith.constant 0 : index
    %c0_0 = arith.constant 0 : index
    %0 = vector.load %arg2[%c0, %c0_0] : memref<128x384xbf16, #tpu.memory_space<vmem>>, vector<128x384xbf16>
    %c0_1 = arith.constant 0 : index
    %c0_2 = arith.constant 0 : index
    %1 = vector.load %arg3[%c0_1, %c0_2] : memref<384x128xbf16, #tpu.memory_space<vmem>>, vector<384x128xbf16>
    %cst = arith.constant dense<0.000000e+00> : vector<128x128xf32>
    %2 = tpu.matmul %0, %1, %cst {dimension_numbers = #tpu.dot_dimension_numbers<[1], [0], [0], [1], [0, 0, 1, 1], [], []>} : vector<128x384xbf16>, vector<384x128xbf16>, vector<128x128xf32> -> vector<128x128xf32>
    %c0_3 = arith.constant 0 : index
    %c0_4 = arith.constant 0 : index
    %3 = vector.load %arg4[%c0_3, %c0_4] : memref<2x128xf32, #tpu.memory_space<vmem>>, vector<2x128xf32>
    %4 = vector.extract_strided_slice %3 {offsets = [0, 0], sizes = [1, 128], strides = [1, 1]} : vector<2x128xf32> to vector<1x128xf32>
    %5 = vector.broadcast %4 : vector<1x128xf32> to vector<128x128xf32>
    %6 = arith.mulf %2, %5 : vector<128x128xf32>
    %7 = vector.extract_strided_slice %3 {offsets = [1, 0], sizes = [1, 128], strides = [1, 1]} : vector<2x128xf32> to vector<1x128xf32>
    %8 = vector.broadcast %7 : vector<1x128xf32> to vector<128x128xf32>
    %9 = arith.addf %6, %8 : vector<128x128xf32>
    %10 = arith.truncf %9 : vector<128x128xf32> to vector<128x128xbf16>
    %c0_5 = arith.constant 0 : index
    %c0_6 = arith.constant 0 : index
    %11 = vector.load %arg5[%c0_5, %c0_6] : memref<128x128xbf16, #tpu.memory_space<vmem>>, vector<128x128xbf16>
    tpu.vector_store %arg5[%c0_5, %c0_6], %10 {strides = array<i32>} : memref<128x128xbf16, #tpu.memory_space<vmem>>, vector<128x128xbf16>,
    return
  }
  func.func @transform_0(%arg0: i32, %arg1: i32) -> (i32, i32) {
    %c0_i32 = arith.constant 0 : i32
    %c0_i32_0 = arith.constant 0 : i32
    return %arg0, %c0_i32 : i32, i32
  }
  func.func @transform_1(%arg0: i32, %arg1: i32) -> (i32, i32) {
    %c0_i32 = arith.constant 0 : i32
    %c0_i32_0 = arith.constant 0 : i32
    return %c0_i32, %arg1 : i32, i32
  }
  func.func @transform_2(%arg0: i32, %arg1: i32) -> (i32, i32) {
    %c0_i32 = arith.constant 0 : i32
    %c0_i32_0 = arith.constant 0 : i32
    return %c0_i32, %arg1 : i32, i32
  }
  func.func @transform_3(%arg0: i32, %arg1: i32) -> (i32, i32) {
    %c0_i32 = arith.constant 0 : i32
    return %arg0, %arg1 : i32, i32
  }
}

</mosaic_0001>

<bundles_post_ra>
// kernel: _mm_pallas.1
= control target key start
LH: loop header
LB: loop body
LE: loop exit
PB: predicated region body
PF: predicated region fallthrough
CT: control target
= control target key end

     0   :  { %8 = vsyncpa [#allocation3], 0  ;;  %s1211_s0 = inlined_call_operand.hbm [shape: bf16[128,384], index: 0, kind: input, shape index: {}]   ;;  %s1212_s1 = inlined_call_operand.hbm [shape: bf16[384,128], index: 1, kind: input, shape index: {}]   ;;  %s1213_s2 = inlined_call_operand.vmem [shape: f32[2,128], index: 2, kind: input, shape index: {}]   ;;  %s1214_s3 = inlined_call_operand.hbm [shape: bf16[128,128], index: 3, kind: output, shape index: {}]  }
   0x1   :  { %9 = vsyncpa [#allocation6], 0 }
   0x2   :  { %10 = vsyncpa [#allocation4], 0  ;;  %s1103_s12 = smov [#allocation2]   ;;  %s1031_s16 = scalar_lea.hbm %s1211_s0, 3072 }
   0x3   :  { %s16_s13 = sshll.u32 %s1103_s12, 4  ;;  %p1032_p0 = scmp.ne.s32.totalorder %s1211_s0, %s1031_s16  ;;  %s17_s13 = int_to_ptr.vmem [resolvable:$true] %s16_s13 }
   0x4   :  { %p1035_p1 = scmp.lt.u32.totalorder %s1031_s16, %s1211_s0 }
   0x6   :  { %p1037_p2 = pnand %p1035_p1, %p1032_p0 }
   0x8   :  { %1040 = shalt.err (!%p1037_p2)
}
   0x9   :  { %s1041_s21 = scalar_lea.vmem %s17_s13, 3072  ;;  %p1046_p4 = scmp.lt.s32.totalorder %s17_s13, %s17_s13 }
   0xa   :  { %p1042_p3 = scmp.ne.s32.totalorder %s17_s13, %s1041_s21  ;;  %p1047_p5 = scmp.lt.s32.totalorder %s1041_s21, %s1041_s21 }
   0xc   :  { %p1048_p6 = por %p1047_p5, %p1046_p4 }
   0xe   :  { %p1049_p7 = pnand %p1048_p6, %p1042_p3 }
  0x10   :  { %1052 = shalt.err (!%p1049_p7)
}
  0x11   :  { %s1104_s22 = smov 192   ;;  %s1105_s23 = smov 12  }
  0x12   :  { %22 = dma.hbm_to_vmem [thread:$0]  %s1211_s0, 3072, %s17_s13, [#allocation3], %s1104_s22, %s1104_s22, %s1105_s23  }
  0x13   :  { %s1106_s26 = smov [#allocation5]   ;;  %s1053_s30 = scalar_lea.hbm %s1212_s1, 3072 }
  0x14   :  { %s28_s27 = sshll.u32 %s1106_s26, 4  ;;  %p1054_p8 = scmp.ne.s32.totalorder %s1212_s1, %s1053_s30  ;;  %s29_s27 = int_to_ptr.vmem [resolvable:$true] %s28_s27 }
  0x15   :  { %p1057_p9 = scmp.lt.u32.totalorder %s1053_s30, %s1212_s1 }
  0x17   :  { %p1059_p10 = pnand %p1057_p9, %p1054_p8 }
  0x19   :  { %1062 = shalt.err (!%p1059_p10)
}
  0x1a   :  { %s1063_s8 = scalar_lea.vmem %s29_s27, 3072  ;;  %p1068_p12 = scmp.lt.s32.totalorder %s29_s27, %s29_s27 }
  0x1b   :  { %p1064_p11 = scmp.ne.s32.totalorder %s29_s27, %s1063_s8  ;;  %p1069_p13 = scmp.lt.s32.totalorder %s1063_s8, %s1063_s8 }
  0x1d   :  { %p1070_p0 = por %p1069_p13, %p1068_p12 }
  0x1f   :  { %p1071_p1 = pnand %p1070_p0, %p1064_p11 }
  0x21   :  { %1074 = shalt.err (!%p1071_p1)
}
  0x22   :  { %s1107_s0 = smov 64   ;;  %s1108_s9 = smov 4  }
  0x23   :  { %34 = dma.hbm_to_vmem [thread:$0]  %s1212_s1, 3072, %s29_s27, [#allocation6], %s1107_s0, %s1107_s0, %s1108_s9  }
  0x24   :  { %1097 = dma.done.wait [#allocation3], 3072  }
  0x25   :  { %1098 = vsyncadd [#allocation3], 4294964224 }
  0x26   :  { %1099 = dma.done.wait [#allocation6], 3072  }
  0x27   :  { %1100 = vsyncadd [#allocation6], 4294964224  ;;  %v975_v0 = vld [vmem:[#allocation5 + $0x40] sm:$0xff]   ;;  %v978_v3 = vld [vmem:[#allocation5 + $0x48] sm:$0xff]   ;;  %v591_v48 = vlaneseq }
  0x28   :  { %v976_v1 = vld [vmem:[#allocation5] sm:$0xff]   ;;  %856 = vmatprep.subr.bf16.mxu0 %v975_v0  ;;  %v979_v4 = vld [vmem:[#allocation5 + $0x8] sm:$0xff]   ;;  %v981_v6 = vld [vmem:[#allocation5 + $0x50] sm:$0xff]  }
  0x29   :  { %v977_v2 = vld [vmem:[#allocation5 + $0x80] sm:$0xff]   ;;  %857 = vmatpush3.bf16.msra.mxu0 %v976_v1  ;;  %v980_v5 = vld [vmem:[#allocation5 + $0x88] sm:$0xff]   ;;  %v982_v7 = vld [vmem:[#allocation5 + $0x10] sm:$0xff]   ;;  %v592_v49 = vshrl.u32 %v591_v48, 7 }
  0x2a   :  { %936 = vmatprep.subr.bf16.mxu1 %v977_v2  ;;  %858 = vmatprep.subr.bf16.mxu0 %v978_v3  ;;  %v983_v8 = vld [vmem:[#allocation5 + $0x90] sm:$0xff]   ;;  %v984_v9 = vld [vmem:[#allocation5 + $0x58] sm:$0xff]   ;;  %v987_v12 = vld [vmem:[#allocation5 + $0x60] sm:$0xff]  }
  0x2b   :  { %937 = vmatpush3.bf16.msra.mxu1 %v977_v2  ;;  %v985_v10 = vld [vmem:[#allocation5 + $0x18] sm:$0xff]   ;;  %v989_v13 = vld [vmem:[#allocation5 + $0xa0] sm:$0xff]   ;;  %v990_v15 = vld [vmem:[#allocation5 + $0x68] sm:$0xff]   ;;  %v593_v50 = vsub.s32 0, %v592_v49  ;;  %v613_v58 = vsub.s32 1, %v592_v49 }
  0x2c   :  { %938 = vmatprep.subr.bf16.mxu1 %v980_v5  ;;  %v986_v11 = vld [vmem:[#allocation5 + $0x98] sm:$0xff]   ;;  %v988_v14 = vld [vmem:[#allocation5 + $0x20] sm:$0xff]   ;;  %v992_v16 = vld [vmem:[#allocation5 + $0xa8] sm:$0xff]  }
  0x2d   :  { %859 = vmatpush3.bf16.msra.mxu0 %v979_v4  ;;  %v991_v17 = vld [vmem:[#allocation5 + $0x28] sm:$0xff]   ;;  %v993_v18 = vld [vmem:[#allocation5 + $0x70] sm:$0xff]   ;;  %v996_v21 = vld [vmem:[#allocation5 + $0x78] sm:$0xff]  }
  0x2e   :  { %860 = vmatprep.subr.bf16.mxu0 %v981_v6  ;;  %v994_v19 = vld [vmem:[#allocation5 + $0x30] sm:$0xff]   ;;  %v998_v22 = vld [vmem:[#allocation5 + $0xb8] sm:$0xff]   ;;  %v999_v26 = vld [vmem:[#allocation2] ss:$12 sps:$4 sm:$0xff]  }
  0x2f   :  { %939 = vmatpush3.bf16.msra.mxu1 %v980_v5  ;;  %v995_v20 = vld [vmem:[#allocation5 + $0xb0] sm:$0xff]   ;;  %v997_v25 = vld [vmem:[#allocation5 + $0x38] sm:$0xff]   ;;  %v1003_v28 = vld [vmem:[#allocation2 + $0x20] ss:$12 sps:$4 sm:$0xff]  }
  0x30   :  { %940 = vmatprep.subr.bf16.mxu1 %v983_v8  ;;  %v1001_v23 = vld [vmem:[#allocation2 + $0x4] ss:$12 sps:$4 sm:$0xff]   ;;  %v1002_v24 = vld [vmem:[#allocation2 + $0x8] ss:$12 sps:$4 sm:$0xff]   ;;  %v1012_v35 = vld [vmem:[#allocation2 + $0x4c] ss:$12 sps:$4 sm:$0xff]  }
  0x31   :  { %861 = vmatpush3.bf16.msra.mxu0 %v982_v7  ;;  %428 = vmatprep.mubr.bf16.mxu0 %v1001_v23  ;;  %v1004_v27 = vld [vmem:[#allocation2 + $0x1c] ss:$12 sps:$4 sm:$0xff]   ;;  %v1010_v29 = vld [vmem:[#allocation2 + $0x38] ss:$12 sps:$4 sm:$0xff]   ;;  %v1007_v31 = vld [vmem:[#allocation2 + $0x34] ss:$12 sps:$4 sm:$0xff]  }
  0x32   :  { %862 = vmatprep.subr.bf16.mxu0 %v984_v9  ;;  %952 = vmatprep.mubr.bf16.mxu1 %v1002_v24  ;;  %v1006_v30 = vld [vmem:[#allocation2 + $0x18] ss:$12 sps:$4 sm:$0xff]   ;;  %v1011_v32 = vld [vmem:[#allocation2 + $0x50] ss:$12 sps:$4 sm:$0xff]   ;;  %v1018_v33 = vld [vmem:[#allocation2 + $0x68] ss:$12 sps:$4 sm:$0xff]  }
  0x33   :  { %941 = vmatpush3.bf16.msra.mxu1 %v983_v8  ;;  %v1009_v34 = vld [vmem:[#allocation2 + $0x30] ss:$12 sps:$4 sm:$0xff]   ;;  %v1019_v36 = vld [vmem:[#allocation2 + $0x80] ss:$12 sps:$4 sm:$0xff]   ;;  %v1026_v37 = vld [vmem:[#allocation2 + $0x98] ss:$12 sps:$4 sm:$0xff]  }
  0x34   :  { %942 = vmatprep.subr.bf16.mxu1 %v986_v11  ;;  %v1014_v38 = vld [vmem:[#allocation2 + $0x48] ss:$12 sps:$4 sm:$0xff]   ;;  %v1015_v39 = vld [vmem:[#allocation2 + $0x64] ss:$12 sps:$4 sm:$0xff]   ;;  %v1017_v41 = vld [vmem:[#allocation2 + $0x60] ss:$12 sps:$4 sm:$0xff]  }
  0x35   :  { %863 = vmatpush3.bf16.msra.mxu0 %v985_v10  ;;  %v1027_v40 = vld [vmem:[#allocation2 + $0xb0] ss:$12 sps:$4 sm:$0xff]   ;;  %v1022_v43 = vld [vmem:[#allocation2 + $0x78] ss:$12 sps:$4 sm:$0xff]   ;;  %v1023_v44 = vld [vmem:[#allocation2 + $0x94] ss:$12 sps:$4 sm:$0xff]  }
  0x36   :  { %864 = vmatprep.subr.bf16.mxu0 %v987_v12  ;;  %v1020_v42 = vld [vmem:[#allocation2 + $0x7c] ss:$12 sps:$4 sm:$0xff]   ;;  %v1028_v46 = vld [vmem:[#allocation2 + $0xac] ss:$12 sps:$4 sm:$0xff]   ;;  %v590_v51 = vld [vmem:[%s1213_s2] sm:$0x3] }
  0x37   :  { %943 = vmatpush3.bf16.msra.mxu1 %v986_v11  ;;  %v1025_v45 = vld [vmem:[#allocation2 + $0x90] ss:$12 sps:$4 sm:$0xff]   ;;  %v1030_v47 = vld [vmem:[#allocation2 + $0xa8] ss:$12 sps:$4 sm:$0xff]   ;;  %v1160_v57 = vrot.slane %v590_v51, %v593_v50  ;;  %v1163_v2 = vrot.slane %v590_v51, %v613_v58  ;;  %s1109_s2 = smov [#allocation7]  }
  0x38   :  { %944 = vmatprep.subr.bf16.mxu1 %v989_v13  ;;  %s716_s13 = sshll.u32 %s1109_s2, 4  ;;  %s717_s13 = int_to_ptr.vmem [resolvable:$true] %s716_s13 }
  0x39   :  { %865 = vmatpush3.bf16.msra.mxu0 %v988_v14  ;;  %s1075_s14 = scalar_lea.vmem %s717_s13, 1024  ;;  %p1080_p3 = scmp.lt.s32.totalorder %s717_s13, %s717_s13 }
  0x3a   :  { %866 = vmatprep.subr.bf16.mxu0 %v990_v15  ;;  %p1076_p2 = scmp.ne.s32.totalorder %s717_s13, %s1075_s14  ;;  %p1081_p4 = scmp.lt.s32.totalorder %s1075_s14, %s1075_s14 }
  0x3b   :  { %945 = vmatpush3.bf16.msra.mxu1 %v989_v13 }
  0x3c   :  { %946 = vmatprep.subr.bf16.mxu1 %v992_v16  ;;  %p1082_p5 = por %p1081_p4, %p1080_p3 }
  0x3d   :  { %867 = vmatpush3.bf16.msra.mxu0 %v991_v17 }
  0x3e   :  { %868 = vmatprep.subr.bf16.mxu0 %v993_v18  ;;  %p1083_p6 = pnand %p1082_p5, %p1076_p2 }
  0x3f   :  { %947 = vmatpush3.bf16.msra.mxu1 %v992_v16 }
  0x40   :  { %948 = vmatprep.subr.bf16.mxu1 %v995_v20 }
  0x41   :  { %869 = vmatpush3.bf16.msra.mxu0 %v994_v19 }
  0x42   :  { %870 = vmatprep.subr.bf16.mxu0 %v996_v21 }
  0x43   :  { %949 = vmatpush3.bf16.msra.mxu1 %v995_v20 }
  0x44   :  { %950 = vmatprep.subr.bf16.mxu1 %v998_v22 }
  0x45   :  { %871 = vmatpush3.bf16.msra.mxu0 %v997_v25 }
  0x47   :  { %951 = vmatpush3.bf16.msra.mxu1 %v998_v22 }
  0x48   :  { %429 = vmatmul.mubr.bf16.vlgmr.msra.gmra.mrb[0].mxu0 %v999_v26 }
  0x49   :  { %436 = vmatprep.mubr.bf16.mxu0 %v1004_v27 }
  0x4a   :  { %953 = vmatmul.mubr.bf16.vlgmr.msra.gmra.mrb[0].mxu1 %v1003_v28 }
  0x4b   :  { %956 = vmatprep.mubr.bf16.mxu1 %v1010_v29 }
  0x50   :  { %437 = vmatmul.mubr.bf16.gmra.mrb[4].mxu0 %v1006_v30 }
  0x51   :  { %444 = vmatprep.mubr.bf16.mxu0 %v1007_v31 }
  0x52   :  { %957 = vmatmul.mubr.bf16.gmra.mrb[4].mxu1 %v1011_v32 }
  0x53   :  { %960 = vmatprep.mubr.bf16.mxu1 %v1018_v33 }
  0x58   :  { %445 = vmatmul.mubr.bf16.gmra.mrb[8].mxu0 %v1009_v34 }
  0x59   :  { %452 = vmatprep.mubr.bf16.mxu0 %v1012_v35 }
  0x5a   :  { %961 = vmatmul.mubr.bf16.gmra.mrb[8].mxu1 %v1019_v36 }
  0x5b   :  { %964 = vmatprep.mubr.bf16.mxu1 %v1026_v37 }
  0x60   :  { %453 = vmatmul.mubr.bf16.gmra.mrb[12].mxu0 %v1014_v38 }
  0x61   :  { %460 = vmatprep.mubr.bf16.mxu0 %v1015_v39 }
  0x62   :  { %965 = vmatmul.mubr.bf16.gmra.mrb[12].mxu1 %v1027_v40 }
  0x68   :  { %461 = vmatmul.mubr.bf16.gmra.mrb[16].mxu0 %v1017_v41 }
  0x69   :  { %468 = vmatprep.mubr.bf16.mxu0 %v1020_v42 }
  0x70   :  { %469 = vmatmul.mubr.bf16.gmra.mrb[20].mxu0 %v1022_v43 }
  0x71   :  { %476 = vmatprep.mubr.bf16.mxu0 %v1023_v44 }
  0x78   :  { %477 = vmatmul.mubr.bf16.gmra.mrb[24].mxu0 %v1025_v45 }
  0x79   :  { %484 = vmatprep.mubr.bf16.mxu0 %v1028_v46 }
  0x80   :  { %485 = vmatmul.mubr.bf16.gmra.mrb[28].mxu0 %v1030_v47 }
 0x11b   :  { %v872_v52 = vpop.f32.mrb[0].mxu0 }
 0x11c   :  { %v873_v53 = vpop.f32.mrb[1].mxu0 }
 0x11d   :  { %v874_v54 = vadd.f32 %v873_v53, %v872_v52  ;;  %v875_v55 = vpop.f32.mrb[2].mxu0  ;;  %v954_v56 = vpop.f32.mrb[0].mxu1 }
 0x11e   :  { %v876_v59 = vpop.f32.mrb[3].mxu0  ;;  %v527_v60 = vpop.f32.mrb[1].mxu1 }
 0x11f   :  { %v877_v61 = vadd.f32 %v876_v59, %v875_v55  ;;  %v528_v62 = vadd.f32 %v874_v54, %v527_v60  ;;  %v955_v63 = vpop.f32.mrb[2].mxu1 }
 0x120   :  { %v530_v0 = vpop.f32.mrb[3].mxu1 }
 0x121   :  { %v595_v1 = vmul.f32 %v1160_v57, %v528_v62  ;;  %v531_v3 = vadd.f32 %v877_v61, %v530_v0 }
 0x123   :  { %v596_v4 = vmul.f32 %v1160_v57, %v531_v3  ;;  %v878_v5 = vpop.f32.mrb[4].mxu0  ;;  %v615_v7 = vadd.f32 %v1163_v2, %v595_v1 }
 0x124   :  { %v879_v6 = vpop.f32.mrb[5].mxu0 }
 0x125   :  { %v616_v8 = vadd.f32 %v1163_v2, %v596_v4  ;;  %v880_v9 = vadd.f32 %v879_v6, %v878_v5  ;;  %v881_v10 = vpop.f32.mrb[6].mxu0  ;;  %v958_v11 = vpop.f32.mrb[4].mxu1 }
 0x126   :  { %v882_v12 = vpop.f32.mrb[7].mxu0  ;;  %v543_v13 = vpop.f32.mrb[5].mxu1 }
 0x127   :  { %v812_v14 = vpack.c.bf16 %v616_v8, %v615_v7  ;;  %v536_v15 = vadd.f32 %v954_v56, %v880_v9  ;;  %v883_v16 = vadd.f32 %v882_v12, %v881_v10  ;;  %v959_v17 = vpop.f32.mrb[6].mxu1 }
 0x128   :  { %v546_v18 = vpop.f32.mrb[7].mxu1 }
 0x129   :  { %813 = vst [vmem:[#allocation7] sm:$0xff] %v812_v14   ;;  %v597_v19 = vmul.f32 %v1160_v57, %v536_v15  ;;  %v539_v20 = vadd.f32 %v955_v63, %v883_v16 }
 0x12b   :  { %v598_v21 = vmul.f32 %v1160_v57, %v539_v20  ;;  %v884_v22 = vpop.f32.mrb[8].mxu0  ;;  %v617_v24 = vadd.f32 %v1163_v2, %v597_v19 }
 0x12c   :  { %v885_v23 = vpop.f32.mrb[9].mxu0 }
 0x12d   :  { %v618_v25 = vadd.f32 %v1163_v2, %v598_v21  ;;  %v886_v26 = vadd.f32 %v885_v23, %v884_v22  ;;  %v887_v27 = vpop.f32.mrb[10].mxu0  ;;  %v962_v28 = vpop.f32.mrb[8].mxu1 }
 0x12e   :  { %v888_v29 = vpop.f32.mrb[11].mxu0  ;;  %v559_v30 = vpop.f32.mrb[9].mxu1 }
 0x12f   :  { %v817_v31 = vpack.c.bf16 %v618_v25, %v617_v24  ;;  %v889_v32 = vadd.f32 %v888_v29, %v887_v27  ;;  %v544_v33 = vadd.f32 %v886_v26, %v543_v13  ;;  %v963_v34 = vpop.f32.mrb[10].mxu1 }
 0x130   :  { %v562_v35 = vpop.f32.mrb[11].mxu1 }
 0x131   :  { %849 = vst [vmem:[#allocation7 + $0x8] sm:$0xff] %v817_v31   ;;  %v599_v36 = vmul.f32 %v1160_v57, %v544_v33  ;;  %v547_v37 = vadd.f32 %v889_v32, %v546_v18 }
 0x133   :  { %v600_v38 = vmul.f32 %v1160_v57, %v547_v37  ;;  %v890_v39 = vpop.f32.mrb[12].mxu0  ;;  %v619_v41 = vadd.f32 %v1163_v2, %v599_v36 }
 0x134   :  { %v891_v40 = vpop.f32.mrb[13].mxu0 }
 0x135   :  { %v620_v42 = vadd.f32 %v1163_v2, %v600_v38  ;;  %v892_v43 = vadd.f32 %v891_v40, %v890_v39  ;;  %v893_v44 = vpop.f32.mrb[14].mxu0  ;;  %v966_v45 = vpop.f32.mrb[12].mxu1 }
 0x136   :  { %v894_v46 = vpop.f32.mrb[15].mxu0  ;;  %v575_v47 = vpop.f32.mrb[13].mxu1 }
 0x137   :  { %v822_v48 = vpack.c.bf16 %v620_v42, %v619_v41  ;;  %v552_v49 = vadd.f32 %v958_v11, %v892_v43  ;;  %v895_v50 = vadd.f32 %v894_v46, %v893_v44  ;;  %v967_v51 = vpop.f32.mrb[14].mxu1 }
 0x138   :  { %v578_v52 = vpop.f32.mrb[15].mxu1 }
 0x139   :  { %850 = vst [vmem:[#allocation7 + $0x10] sm:$0xff] %v822_v48   ;;  %v601_v53 = vmul.f32 %v1160_v57, %v552_v49  ;;  %v555_v54 = vadd.f32 %v959_v17, %v895_v50 }
 0x13b   :  { %v602_v55 = vmul.f32 %v1160_v57, %v555_v54  ;;  %v896_v56 = vpop.f32.mrb[16].mxu0  ;;  %v621_v59 = vadd.f32 %v1163_v2, %v601_v53 }
 0x13c   :  { %v897_v58 = vpop.f32.mrb[17].mxu0 }
 0x13d   :  { %v622_v60 = vadd.f32 %v1163_v2, %v602_v55  ;;  %v898_v61 = vadd.f32 %v897_v58, %v896_v56  ;;  %v899_v62 = vpop.f32.mrb[18].mxu0 }
 0x13e   :  { %v900_v63 = vpop.f32.mrb[19].mxu0 }
 0x13f   :  { %v827_v0 = vpack.c.bf16 %v622_v60, %v621_v59  ;;  %v901_v1 = vadd.f32 %v900_v63, %v899_v62  ;;  %v560_v3 = vadd.f32 %v898_v61, %v559_v30 }
 0x141   :  { %851 = vst [vmem:[#allocation7 + $0x18] sm:$0xff] %v827_v0   ;;  %v603_v4 = vmul.f32 %v1160_v57, %v560_v3  ;;  %v563_v5 = vadd.f32 %v901_v1, %v562_v35 }
 0x143   :  { %v604_v6 = vmul.f32 %v1160_v57, %v563_v5  ;;  %v902_v7 = vpop.f32.mrb[20].mxu0  ;;  %v623_v9 = vadd.f32 %v1163_v2, %v603_v4 }
 0x144   :  { %v903_v8 = vpop.f32.mrb[21].mxu0 }
 0x145   :  { %v624_v10 = vadd.f32 %v1163_v2, %v604_v6  ;;  %v904_v11 = vadd.f32 %v903_v8, %v902_v7  ;;  %v905_v12 = vpop.f32.mrb[22].mxu0 }
 0x146   :  { %v906_v13 = vpop.f32.mrb[23].mxu0 }
 0x147   :  { %v832_v14 = vpack.c.bf16 %v624_v10, %v623_v9  ;;  %v568_v15 = vadd.f32 %v962_v28, %v904_v11  ;;  %v907_v16 = vadd.f32 %v906_v13, %v905_v12 }
 0x149   :  { %852 = vst [vmem:[#allocation7 + $0x20] sm:$0xff] %v832_v14   ;;  %v605_v17 = vmul.f32 %v1160_v57, %v568_v15  ;;  %v571_v18 = vadd.f32 %v963_v34, %v907_v16 }
 0x14b   :  { %v606_v19 = vmul.f32 %v1160_v57, %v571_v18  ;;  %v908_v20 = vpop.f32.mrb[24].mxu0  ;;  %v625_v22 = vadd.f32 %v1163_v2, %v605_v17 }
 0x14c   :  { %v909_v21 = vpop.f32.mrb[25].mxu0 }
 0x14d   :  { %v626_v23 = vadd.f32 %v1163_v2, %v606_v19  ;;  %v910_v24 = vadd.f32 %v909_v21, %v908_v20  ;;  %v911_v25 = vpop.f32.mrb[26].mxu0 }
 0x14e   :  { %v912_v26 = vpop.f32.mrb[27].mxu0 }
 0x14f   :  { %v837_v27 = vpack.c.bf16 %v626_v23, %v625_v22  ;;  %v913_v29 = vadd.f32 %v912_v26, %v911_v25  ;;  %v576_v30 = vadd.f32 %v910_v24, %v575_v47 }
 0x151   :  { %853 = vst [vmem:[#allocation7 + $0x28] sm:$0xff] %v837_v27   ;;  %v607_v28 = vmul.f32 %v1160_v57, %v576_v30  ;;  %v579_v31 = vadd.f32 %v913_v29, %v578_v52 }
 0x153   :  { %v608_v32 = vmul.f32 %v1160_v57, %v579_v31  ;;  %v914_v33 = vpop.f32.mrb[28].mxu0  ;;  %v627_v35 = vadd.f32 %v1163_v2, %v607_v28 }
 0x154   :  { %v915_v34 = vpop.f32.mrb[29].mxu0 }
 0x155   :  { %v628_v36 = vadd.f32 %v1163_v2, %v608_v32  ;;  %v916_v37 = vadd.f32 %v915_v34, %v914_v33  ;;  %v917_v38 = vpop.f32.mrb[30].mxu0 }
 0x156   :  { %v918_v39 = vpop.f32.mrb[31].mxu0 }
 0x157   :  { %v842_v40 = vpack.c.bf16 %v628_v36, %v627_v35  ;;  %v584_v41 = vadd.f32 %v966_v45, %v916_v37  ;;  %v919_v42 = vadd.f32 %v918_v39, %v917_v38 }
 0x159   :  { %854 = vst [vmem:[#allocation7 + $0x30] sm:$0xff] %v842_v40   ;;  %v609_v43 = vmul.f32 %v1160_v57, %v584_v41  ;;  %v587_v44 = vadd.f32 %v967_v51, %v919_v42 }
 0x15b   :  { %v610_v46 = vmul.f32 %v1160_v57, %v587_v44  ;;  %v629_v47 = vadd.f32 %v1163_v2, %v609_v43 }
 0x15d   :  { %v630_v48 = vadd.f32 %v1163_v2, %v610_v46 }
 0x15f   :  { %v847_v49 = vpack.c.bf16 %v630_v48, %v629_v47 }
 0x161   :  { %855 = vst [vmem:[#allocation7 + $0x38] sm:$0xff] %v847_v49  }
 0x162   :  { %1086 = shalt.err (!%p1083_p6)
}
 0x163   :  { %s1087_s17 = scalar_lea.hbm %s1214_s3, 1024 }
 0x164   :  { %p1088_p7 = scmp.ne.s32.totalorder %s1214_s3, %s1087_s17  ;;  %p1091_p8 = scmp.lt.u32.totalorder %s1087_s17, %s1214_s3 }
 0x166   :  { %p1093_p9 = pnand %p1091_p8, %p1088_p7 }
 0x168   :  { %1096 = shalt.err (!%p1093_p9)
}
 0x169   :  { %722 = dma.vmem_to_hbm [thread:$0]  %s717_s13, 1024, %s1214_s3, [#allocation4], %s1107_s0, %s1107_s0, %s1108_s9  }
 0x16a   :  { %1101 = dma.done.wait [#allocation4], 1024  }
 0x16b   :  { %1102 = vsyncadd [#allocation4], 4294966272 }
 0x16c   :  { %726 = vsyncpa [#allocation3], 1 }
 0x16d   :  { %727 = vsyncpa [#allocation6], 1 }
 0x16e   :  { %728 = vsyncpa [#allocation4], 1 }

</bundles_post_ra>
